<compile_context>
chip_gen: v6e
topology: v6e:2x2x1
jax: 0.10.0
libtpu: 0.0.40
codegen_flags: <defaults>
</compile_context>

<pallas_src>
import jax
import jax.numpy as jnp
import numpy as np
from jax.experimental import pallas as pl
from jax.experimental.pallas import tpu as pltpu

_HID = 64  # hidden width of the attention MLP: Linear(nhid, 64) -> ReLU -> Linear(64, 1)


def _self_attn_kernel(inp_ref, lead_ref, w1s_ref, w1l_ref, b1_ref, w2_ref, b2_ref,
                      out_ref):
    bb, nins, d = inp_ref.shape
    inp = inp_ref[...]                       # (bb, nins, D)
    lead = lead_ref[...]                     # (bb, D)

    # First Linear: one big MXU matmul over all bb*nins rows (fills the MXU M
    # dim) + a once-per-batch-row projection of the lead row.  This replaces the
    # PyTorch repeat+concat, which would project the same lead row nins times.
    h_self = jnp.dot(inp.reshape(bb * nins, d), w1s_ref[...],
                     preferred_element_type=jnp.float32).reshape(bb, nins, _HID)
    h_lead = jnp.dot(lead, w1l_ref[...],
                     preferred_element_type=jnp.float32)                 # (bb, 64)
    h = jnp.maximum(h_self + h_lead[:, None, :] + b1_ref[...], 0.0)      # (bb, nins, 64)

    # Second Linear has output width 1 -> VPU multiply + lane reduction instead
    # of wasting 255/256 MXU output columns on an N=1 matmul.
    a = jnp.sum(h * w2_ref[...], axis=-1) + b2_ref[...]                  # (bb, nins)

    # Softmax over the instance axis (dim=1 of the original (B, nins) logits).
    m = jnp.max(a, axis=1, keepdims=True)
    e = jnp.exp(a - m)
    s = jnp.sum(e, axis=1, keepdims=True)
    w = e * pl.reciprocal(s, approx=True)                                # EUP slot

    # Weighted sum over instances -> lane-dense 2-D output block.
    out = jnp.sum(inp * w[:, :, None], axis=1)                           # (bb, D)
    out_ref[...] = out.astype(out_ref.dtype)


def _choose_batch_block(batch, nins):
    """Rows-per-grid-step: aim for >=256 MXU rows/step; >=2 steps for v7x's 2 TCs."""
    bb = max(1, 256 // max(1, nins))
    bb = min(bb, batch)
    n_steps = -(-batch // bb)
    # v7x has 2 TensorCores: keep >= 2 parallel grid steps if each still gets
    # >= 128 matmul rows (no effect on v5e/v6e which have 1 TC).
    if n_steps < 2 and batch >= 2 and (batch // 2) * nins >= 128:
        bb = -(-batch // 2)
        n_steps = 2
    if n_steps > 1:
        bb = ((bb + 7) // 8) * 8          # sub-batch blocks stay 8-sublane aligned
        n_steps = -(-batch // bb)
    return bb, n_steps


def self_attention_forward(inputs, index, claims, params):
    """Pallas forward. `index` is a Python int (mirrors the PyTorch control flow).

    Note: a distinct Python `index` value triggers a retrace; if index varies a
    lot at runtime, hoist the gather with a traced index instead.
    """
    B, nins, D = inputs.shape
    w1, b1, w2, b2 = params
    nhid = w1.shape[0]
    assert nhid == 2 * D, (nhid, D)

    # Lead row (no repeat / no concat): the kernel uses the split-w1 identity
    #   cat([lead, inputs], -1) @ w1 == inputs @ w1[D:] + lead @ w1[:D]
    if index > -1:
        lead = jax.lax.dynamic_index_in_dim(inputs, index, axis=1, keepdims=False)
    else:
        lead = claims                                                    # (B, D)

    w1_lead = w1[:D]                        # (D, 64)
    w1_self = w1[D:]                        # (D, 64)
    b1_2d = b1.reshape(1, _HID)             # (1, 64)
    w2_row = w2.reshape(1, _HID)            # (1, 64)  (w2 is (64, 1))
    b2_2d = b2.reshape(1, 1)                # (1, 1)

    bb, n_steps = _choose_batch_block(B, nins)
    B_pad = bb * n_steps
    if B_pad != B:
        inputs_p = jnp.pad(inputs, ((0, B_pad - B), (0, 0), (0, 0)))
        lead_p = jnp.pad(lead, ((0, B_pad - B), (0, 0)))
    else:
        inputs_p, lead_p = inputs, lead

    out = pl.pallas_call(
        _self_attn_kernel,
        out_shape=jax.ShapeDtypeStruct((B_pad, D), inputs.dtype),
        grid_spec=pltpu.PrefetchScalarGridSpec(
            num_scalar_prefetch=0,
            grid=(n_steps,),
            in_specs=[
                pl.BlockSpec((bb, nins, D), lambda i: (i, 0, 0)),   # inputs chunk
                pl.BlockSpec((bb, D), lambda i: (i, 0)),            # lead chunk
                pl.BlockSpec((D, _HID), lambda i: (0, 0)),          # w1_self
                pl.BlockSpec((D, _HID), lambda i: (0, 0)),          # w1_lead
                pl.BlockSpec((1, _HID), lambda i: (0, 0)),          # b1
                pl.BlockSpec((1, _HID), lambda i: (0, 0)),          # w2 (row)
                pl.BlockSpec((1, 1), lambda i: (0, 0)),             # b2
            ],
            out_specs=pl.BlockSpec((bb, D), lambda i: (i, 0)),
        ),
        compiler_params=pltpu.CompilerParams(dimension_semantics=("parallel",)),
    )(inputs_p, lead_p, w1_self, w1_lead, b1_2d, w2_row, b2_2d)
    return out[:B]


def self_attention_reference(inputs, index, claims, params):
    """Plain-JAX reference mirroring the PyTorch forward (with explicit concat)."""
    B, nins, D = inputs.shape
    w1, b1, w2, b2 = params
    if index > -1:
        lead = jnp.broadcast_to(inputs[:, index, :][:, None, :], (B, nins, D))
    else:
        lead = jnp.broadcast_to(claims[:, None, :], (B, nins, claims.shape[-1]))
    tmp = jnp.concatenate([lead, inputs], axis=2)
    h = jnp.maximum(tmp @ w1 + b1[0], 0.0)
    attn = (h @ w2 + b2[0]).squeeze(-1)                                  # (B, nins)
    weights = jax.nn.softmax(attn, axis=1)
    return jnp.sum(inputs * weights[..., None], axis=1)


def init_params(key, nhid):
    """Deterministic init mimicking torch Linear (uniform +/- 1/sqrt(fan_in))."""
    k1, k2, k3, k4 = jax.random.split(key, 4)
    bound1 = 1.0 / np.sqrt(nhid)
    bound2 = 1.0 / np.sqrt(_HID)
    w1 = jax.random.uniform(k1, (nhid, _HID), jnp.float32, -bound1, bound1)
    b1 = jax.random.uniform(k2, (1, _HID), jnp.float32, -bound1, bound1)
    w2 = jax.random.uniform(k3, (_HID, 1), jnp.float32, -bound2, bound2)
    b2 = jax.random.uniform(k4, (1, 1), jnp.float32, -bound2, bound2)
    return (w1, b1, w2, b2)


def _check(B, nins, D, key):
    nhid = 2 * D
    k_in, k_cl, k_p = jax.random.split(key, 3)
    inputs = jax.random.normal(k_in, (B, nins, D), jnp.float32)
    claims = jax.random.normal(k_cl, (B, D), jnp.float32)
    params = init_params(k_p, nhid)

    for index in (-1, 3):   # claims path and self-select path
        out = self_attention_forward(inputs, index, claims, params)
        jax.block_until_ready(out)
        ref = self_attention_reference(inputs, index, claims, params)
        assert out.shape == (B, D)
        # tolerance accounts for the approx (EUP) reciprocal in the softmax
        np.testing.assert_allclose(np.asarray(out), np.asarray(ref),
                                   rtol=2e-3, atol=2e-3)


if __name__ == "__main__":
    key = jax.random.PRNGKey(0)
    k0, k1 = jax.random.split(key)
    # Small canonical shape (single grid step, whole batch per step).
    _check(B=2, nins=8, D=16, key=k0)
    # Larger batch exercising the multi-step grid + zero-padding path.
    _check(B=40, nins=8, D=16, key=k1)
    print("KERNEL_OK")
</pallas_src>

<mosaic_0001>
module attributes {stable_mosaic.version = 11 : i64} {
  func.func @_self_attn_kernel(%arg0: i32, %arg1: memref<2x8x16xf32, #tpu.memory_space<vmem>>, %arg2: memref<2x16xf32, #tpu.memory_space<vmem>>, %arg3: memref<16x64xf32, #tpu.memory_space<vmem>>, %arg4: memref<16x64xf32, #tpu.memory_space<vmem>>, %arg5: memref<1x64xf32, #tpu.memory_space<vmem>>, %arg6: memref<1x64xf32, #tpu.memory_space<vmem>>, %arg7: memref<1x1xf32, #tpu.memory_space<vmem>>, %arg8: memref<2x16xf32, #tpu.memory_space<vmem>>) attributes {dimension_semantics = [#tpu.dimension_semantics<parallel>], iteration_bounds = array<i64: 1>, scalar_prefetch = 0 : i64, scratch_operands = 0 : i64, tpu.core_type = #tpu.core_type<tc>, window_params = [{transform_indices = @transform_0, window_bounds = array<i64: 2, 8, 16>}, {transform_indices = @transform_1, window_bounds = array<i64: 2, 16>}, {pipeline_mode = #tpu.pipeline_mode<synchronous>, transform_indices = @transform_2, window_bounds = array<i64: 16, 64>}, {pipeline_mode = #tpu.pipeline_mode<synchronous>, transform_indices = @transform_3, window_bounds = array<i64: 16, 64>}, {pipeline_mode = #tpu.pipeline_mode<synchronous>, transform_indices = @transform_4, window_bounds = array<i64: 1, 64>}, {pipeline_mode = #tpu.pipeline_mode<synchronous>, transform_indices = @transform_5, window_bounds = array<i64: 1, 64>}, {pipeline_mode = #tpu.pipeline_mode<synchronous>, transform_indices = @transform_6, window_bounds = array<i64: 1, 1>}, {transform_indices = @transform_7, window_bounds = array<i64: 2, 16>}]} {
    %c0 = arith.constant 0 : index
    %c0_0 = arith.constant 0 : index
    %c0_1 = arith.constant 0 : index
    %0 = vector.load %arg1[%c0, %c0_0, %c0_1] : memref<2x8x16xf32, #tpu.memory_space<vmem>>, vector<2x8x16xf32>
    %c0_2 = arith.constant 0 : index
    %c0_3 = arith.constant 0 : index
    %1 = vector.load %arg2[%c0_2, %c0_3] : memref<2x16xf32, #tpu.memory_space<vmem>>, vector<2x16xf32>
    %2 = vector.shape_cast %0 : vector<2x8x16xf32> to vector<16x16xf32>
    %c0_4 = arith.constant 0 : index
    %c0_5 = arith.constant 0 : index
    %3 = vector.load %arg3[%c0_4, %c0_5] : memref<16x64xf32, #tpu.memory_space<vmem>>, vector<16x64xf32>
    %cst = arith.constant dense<0.000000e+00> : vector<16x64xf32>
    %4 = tpu.matmul %2, %3, %cst {dimension_numbers = #tpu.dot_dimension_numbers<[1], [0], [0], [1], [0, 0, 1, 1], [], []>} : vector<16x16xf32>, vector<16x64xf32>, vector<16x64xf32> -> vector<16x64xf32>
    %5 = vector.shape_cast %4 : vector<16x64xf32> to vector<2x8x64xf32>
    %c0_6 = arith.constant 0 : index
    %c0_7 = arith.constant 0 : index
    %6 = vector.load %arg4[%c0_6, %c0_7] : memref<16x64xf32, #tpu.memory_space<vmem>>, vector<16x64xf32>
    %cst_8 = arith.constant dense<0.000000e+00> : vector<2x64xf32>
    %7 = tpu.matmul %1, %6, %cst_8 {dimension_numbers = #tpu.dot_dimension_numbers<[1], [0], [0], [1], [0, 0, 1, 1], [], []>} : vector<2x16xf32>, vector<16x64xf32>, vector<2x64xf32> -> vector<2x64xf32>
    %8 = vector.shape_cast %7 : vector<2x64xf32> to vector<2x1x64xf32>
    %9 = vector.broadcast %8 : vector<2x1x64xf32> to vector<2x8x64xf32>
    %10 = arith.addf %5, %9 : vector<2x8x64xf32>
    %c0_9 = arith.constant 0 : index
    %c0_10 = arith.constant 0 : index
    %11 = vector.load %arg5[%c0_9, %c0_10] : memref<1x64xf32, #tpu.memory_space<vmem>>, vector<1x64xf32>
    %12 = vector.shape_cast %11 : vector<1x64xf32> to vector<1x1x64xf32>
    %13 = vector.broadcast %12 : vector<1x1x64xf32> to vector<2x8x64xf32>
    %14 = arith.addf %10, %13 : vector<2x8x64xf32>
    %cst_11 = arith.constant 0.000000e+00 : f32
    %15 = vector.broadcast %cst_11 : f32 to vector<2x8x64xf32>
    %16 = arith.maximumf %14, %15 : vector<2x8x64xf32>
    %c0_12 = arith.constant 0 : index
    %c0_13 = arith.constant 0 : index
    %17 = vector.load %arg6[%c0_12, %c0_13] : memref<1x64xf32, #tpu.memory_space<vmem>>, vector<1x64xf32>
    %18 = vector.shape_cast %17 : vector<1x64xf32> to vector<1x1x64xf32>
    %19 = vector.broadcast %18 : vector<1x1x64xf32> to vector<2x8x64xf32>
    %20 = arith.mulf %16, %19 : vector<2x8x64xf32>
    %cst_14 = arith.constant dense<0.000000e+00> : vector<2x8xf32>
    %21 = vector.multi_reduction <add>, %20, %cst_14 [2] : vector<2x8x64xf32> to vector<2x8xf32>
    %c0_15 = arith.constant 0 : index
    %c0_16 = arith.constant 0 : index
    %22 = vector.load %arg7[%c0_15, %c0_16] : memref<1x1xf32, #tpu.memory_space<vmem>>, vector<1x1xf32>
    %23 = vector.broadcast %22 : vector<1x1xf32> to vector<2x8xf32>
    %24 = arith.addf %21, %23 : vector<2x8xf32>
    %cst_17 = arith.constant dense<0xFF800000> : vector<2xf32>
    %25 = vector.multi_reduction <maximumf>, %24, %cst_17 [1] : vector<2x8xf32> to vector<2xf32>
    %26 = vector.shape_cast %25 : vector<2xf32> to vector<2x1xf32>
    %27 = vector.broadcast %26 : vector<2x1xf32> to vector<2x8xf32>
    %28 = arith.subf %24, %27 : vector<2x8xf32>
    %29 = math.exp %28 : vector<2x8xf32>
    %cst_18 = arith.constant dense<0.000000e+00> : vector<2xf32>
    %30 = vector.multi_reduction <add>, %29, %cst_18 [1] : vector<2x8xf32> to vector<2xf32>
    %31 = vector.shape_cast %30 : vector<2xf32> to vector<2x1xf32>
    %32 = tpu.reciprocal %31 {approx = true} : vector<2x1xf32> -> vector<2x1xf32>
    %33 = vector.broadcast %32 : vector<2x1xf32> to vector<2x8xf32>
    %34 = arith.mulf %29, %33 : vector<2x8xf32>
    %35 = vector.shape_cast %34 : vector<2x8xf32> to vector<2x8x1xf32>
    %36 = vector.broadcast %35 : vector<2x8x1xf32> to vector<2x8x16xf32>
    %37 = arith.mulf %0, %36 : vector<2x8x16xf32>
    %cst_19 = arith.constant dense<0.000000e+00> : vector<2x16xf32>
    %38 = vector.multi_reduction <add>, %37, %cst_19 [1] : vector<2x8x16xf32> to vector<2x16xf32>
    %c0_20 = arith.constant 0 : index
    %c0_21 = arith.constant 0 : index
    %39 = vector.load %arg8[%c0_20, %c0_21] : memref<2x16xf32, #tpu.memory_space<vmem>>, vector<2x16xf32>
    tpu.vector_store %arg8[%c0_20, %c0_21], %38 {strides = array<i32>} : memref<2x16xf32, #tpu.memory_space<vmem>>, vector<2x16xf32>,
    return
  }
  func.func @transform_0(%arg0: i32) -> (i32, i32, i32) {
    %c0_i32 = arith.constant 0 : i32
    %c0_i32_0 = arith.constant 0 : i32
    %c0_i32_1 = arith.constant 0 : i32
    return %arg0, %c0_i32, %c0_i32_0 : i32, i32, i32
  }
  func.func @transform_1(%arg0: i32) -> (i32, i32) {
    %c0_i32 = arith.constant 0 : i32
    %c0_i32_0 = arith.constant 0 : i32
    return %arg0, %c0_i32 : i32, i32
  }
  func.func @transform_2(%arg0: i32) -> (i32, i32) {
    %c0_i32 = arith.constant 0 : i32
    %c0_i32_0 = arith.constant 0 : i32
    %c0_i32_1 = arith.constant 0 : i32
    return %c0_i32, %c0_i32_0 : i32, i32
  }
  func.func @transform_3(%arg0: i32) -> (i32, i32) {
    %c0_i32 = arith.constant 0 : i32
    %c0_i32_0 = arith.constant 0 : i32
    %c0_i32_1 = arith.constant 0 : i32
    return %c0_i32, %c0_i32_0 : i32, i32
  }
  func.func @transform_4(%arg0: i32) -> (i32, i32) {
    %c0_i32 = arith.constant 0 : i32
    %c0_i32_0 = arith.constant 0 : i32
    %c0_i32_1 = arith.constant 0 : i32
    return %c0_i32, %c0_i32_0 : i32, i32
  }
  func.func @transform_5(%arg0: i32) -> (i32, i32) {
    %c0_i32 = arith.constant 0 : i32
    %c0_i32_0 = arith.constant 0 : i32
    %c0_i32_1 = arith.constant 0 : i32
    return %c0_i32, %c0_i32_0 : i32, i32
  }
  func.func @transform_6(%arg0: i32) -> (i32, i32) {
    %c0_i32 = arith.constant 0 : i32
    %c0_i32_0 = arith.constant 0 : i32
    %c0_i32_1 = arith.constant 0 : i32
    return %c0_i32, %c0_i32_0 : i32, i32
  }
  func.func @transform_7(%arg0: i32) -> (i32, i32) {
    %c0_i32 = arith.constant 0 : i32
    %c0_i32_0 = arith.constant 0 : i32
    return %arg0, %c0_i32 : i32, i32
  }
}

</mosaic_0001>

<bundles_post_ra>
// kernel: tpu_custom_call.1
= control target key start
LH: loop header
LB: loop body
LE: loop exit
PB: predicated region body
PF: predicated region fallthrough
CT: control target
= control target key end

     0   :  { %s660_s0 = inlined_call_operand.hbm [shape: f32[2,8,16], index: 0, kind: input, shape index: {}]   ;;  %s661_s1 = inlined_call_operand.vmem [shape: f32[2,16], index: 1, kind: input, shape index: {}]   ;;  %s662_s2 = inlined_call_operand.hbm [shape: f32[16,64], index: 2, kind: input, shape index: {}]   ;;  %s663_s3 = inlined_call_operand.hbm [shape: f32[16,64], index: 3, kind: input, shape index: {}]   ;;  %s664_s4 = inlined_call_operand.vmem [shape: f32[1,64], index: 4, kind: input, shape index: {}]   ;;  %s665_s5 = inlined_call_operand.vmem [shape: f32[1,64], index: 5, kind: input, shape index: {}]   ;;  %s666_s6 = inlined_call_operand.<no memory space> [shape: f32[1,1], index: 6, kind: input, shape index: {}]   ;;  %s667_s7 = inlined_call_operand.hbm [shape: f32[2,16], index: 7, kind: output, shape index: {}]  }
   0x1   :  { %v12_v0 = vstv %s666_s6 }
   0x2   :  { %13 = vst [vmem:[#allocation2] sm:$0x1] %v12_v0 }
   0x3   :  { %14 = vsyncpa [#allocation4], 0 }
   0x4   :  { %15 = vsyncpa [#allocation7], 0 }
   0x5   :  { %16 = vsyncpa [#allocation5], 0  ;;  %s556_s26 = smov [#allocation6]   ;;  %s557_s28 = smov [#allocation3]  }
   0x6   :  { %s36_s27 = sshll.u32 %s556_s26, 4  ;;  %s22_s29 = sshll.u32 %s557_s28, 4  ;;  %s37_s27 = int_to_ptr.vmem [resolvable:$true] %s36_s27  ;;  %s23_s29 = int_to_ptr.vmem [resolvable:$true] %s22_s29 }
   0x7   :  { %s478_s30 = scalar_lea.vmem %s37_s27, 256  ;;  %p483_p1 = scmp.lt.s32.totalorder %s37_s27, %s37_s27 }
   0x8   :  { %p479_p0 = scmp.ne.s32.totalorder %s37_s27, %s478_s30  ;;  %p484_p2 = scmp.lt.s32.totalorder %s478_s30, %s478_s30 }
   0xa   :  { %p485_p3 = por %p484_p2, %p483_p1 }
   0xc   :  { %p486_p4 = pnand %p485_p3, %p479_p0 }
   0xe   :  { %489 = shalt.err (!%p486_p4)
}
   0xf   :  { %s558_s8 = smov 128   ;;  %s559_s9 = smov 8  }
  0x10   :  { %42 = dma.hbm_to_vmem [thread:$0]  %s662_s2, 256, %s37_s27, [#allocation7], %s558_s8, %s558_s8, %s559_s9  }
  0x11   :  { %s498_s11 = scalar_lea.vmem %s23_s29, 256  ;;  %p503_p6 = scmp.lt.s32.totalorder %s23_s29, %s23_s29 }
  0x12   :  { %p499_p5 = scmp.ne.s32.totalorder %s23_s29, %s498_s11  ;;  %p504_p7 = scmp.lt.s32.totalorder %s498_s11, %s498_s11 }
  0x14   :  { %p505_p8 = por %p504_p7, %p503_p6 }
  0x16   :  { %p506_p9 = pnand %p505_p8, %p499_p5 }
  0x18   :  { %509 = shalt.err (!%p506_p9)
}
  0x19   :  { %28 = dma.hbm_to_vmem [thread:$0]  %s660_s0, 256, %s23_s29, [#allocation4], %s558_s8, %s558_s8, %s559_s9  }
  0x1a   :  { %s560_s14 = smov [#allocation8]  }
  0x1b   :  { %s48_s15 = sshll.u32 %s560_s14, 4  ;;  %s49_s15 = int_to_ptr.vmem [resolvable:$true] %s48_s15 }
  0x1c   :  { %s518_s16 = scalar_lea.vmem %s49_s15, 256  ;;  %p523_p11 = scmp.lt.s32.totalorder %s49_s15, %s49_s15 }
  0x1d   :  { %p519_p10 = scmp.ne.s32.totalorder %s49_s15, %s518_s16  ;;  %p524_p12 = scmp.lt.s32.totalorder %s518_s16, %s518_s16 }
  0x1f   :  { %p525_p13 = por %p524_p12, %p523_p11 }
  0x21   :  { %p526_p0 = pnand %p525_p13, %p519_p10 }
  0x23   :  { %529 = shalt.err (!%p526_p0)
}
  0x24   :  { %54 = dma.hbm_to_vmem [thread:$0]  %s663_s3, 256, %s49_s15, [#allocation7], %s558_s8, %s558_s8, %s559_s9  }
  0x25   :  { %550 = dma.done.wait [#allocation4], 256  }
  0x26   :  { %551 = vsyncadd [#allocation4], 4294967040 }
  0x27   :  { %552 = dma.done.wait [#allocation7], 512  }
  0x28   :  { %553 = vsyncadd [#allocation7], 4294966784  ;;  %v561_v1 = vmov 0.0   ;;  %vm562_vm0 = vmmov 0   ;;  %v158_v2 = vld [vmem:[#allocation8 + $0x8] sm:$0xff]  ;;  %v74_v3 = vld [vmem:[#allocation6 + $0x8] sm:$0xff]  ;;  %v236_v13 = vlaneseq }
  0x29   :  { %445 = vmatprep.subr.mxu1 %v561_v1  ;;  %449 = vmatprep.mubr.msk.f32.mxu1 %vm562_vm0, %v561_v1  ;;  %v157_v4 = vld [vmem:[#allocation8] sm:$0xff]  ;;  %v73_v5 = vld [vmem:[#allocation6] sm:$0xff]  ;;  %vm75_vm1 = vcmask 130048   ;;  %v623_v8 = vld [vmem:[#allocation3 + $0x8] sm:$0xff]  ;;  %v563_v10 = vmov 0   ;;  %vm287_vm2 = vcmask 523264  }
  0x2a   :  { %446 = vmatpush3.msra.mxu1 %v158_v2  ;;  %438 = vmatprep.subr.mxu0 %v74_v3  ;;  %v72_v6 = vld [vmem:[%s661_s1] sm:$0x3]  ;;  %v564_v11 = vmov 1966171168   ;;  %v630_v15 = vshrl.u32 %v236_v13, 7  ;;  %v309_v40 = vand.u32 127, %v236_v13 }
  0x2b   :  { %447 = vmatprep.subr.mxu1 %v561_v1  ;;  %439 = vmatpush3.msra.mxu0 %v74_v3  ;;  %v621_v7 = vld [vmem:[#allocation3] sm:$0xff]  ;;  %v430_v9 = vld [vmem:[#allocation2] ss:$0 sm:$0xff]  ;;  %v234_v12 = vunpack.c.l.s4 %v564_v11  ;;  %vm318_vm3 = vcmask 1041409   ;;  %vm321_vm4 = vcmask 58368   ;;  %vm407_vm5 = vcmask 123904  }
  0x2c   :  { %448 = vmatpush3.msra.mxu1 %v157_v4  ;;  %440 = vmatprep.subr.mxu0 %v73_v5  ;;  %v634_v19 = vsub.s32 0, %v630_v15  ;;  %v428_v26 = vld [vmem:[%s664_s4] ss:$0 sm:$0xff]  ;;  %v312_v43 = vsub.s32 %v309_v40, %v630_v15  ;;  %v332_v51 = vsub.s32 1, %v630_v15  ;;  %s565_s4 = smov [#allocation9]  }
  0x2d   :  { %450 = vmatmul.mubr.msk.f32.vlgmr.msra.gmra.mxu1 %vm75_vm1, %v72_v6  ;;  %441 = vmatpush3.msra.mxu0 %v73_v5  ;;  %v235_v14 = vunpack.c.0.s8 %v234_v12  ;;  %v429_v32 = vld [vmem:[%s665_s5] ss:$0 sm:$0xff]  ;;  %s415_s5 = sshll.u32 %s565_s4, 4  ;;  %s416_s5 = int_to_ptr.vmem [resolvable:$true] %s415_s5 }
  0x2e   :  { %442 = vmatprep.mubr.msk.f32.mxu0 %vm75_vm1, %v621_v7  ;;  %462 = vset.pattern.permute.xlu1 %v563_v10  ;;  %s530_s21 = scalar_lea.vmem %s416_s5, 32  ;;  %p535_p2 = scmp.lt.s32.totalorder %s416_s5, %s416_s5 }
  0x2f   :  { %443 = vmatmul.mubr.msk.f32.vlgmr.msra.gmra.mxu0 %vm75_vm1, %v623_v8  ;;  %463 = vset.pattern.permute.xlu0 %v563_v10  ;;  %v238_v16 = vsub.s32 %v235_v14, %v630_v15  ;;  %p531_p1 = scmp.ne.s32.totalorder %s416_s5, %s530_s21  ;;  %p536_p3 = scmp.lt.s32.totalorder %s530_s21, %s530_s21 }
  0x30   :  { %301 = vperm.xlu1 %462, %v430_v9  }
  0x31   :  { %p537_p4 = por %p536_p3, %p535_p2 }
  0x33   :  { %p538_p5 = pnand %p537_p4, %p531_p1 }
  0xab   :  { %v302_v41 = vpop.permute.xlu1 %301 }
  0xed   :  { %v228_v17 = vpop.f32.mrf.mxu1 }
  0xee   :  { %v239_v18 = vrot.slane %v228_v17, %v238_v16 }
  0xef   :  { %v444_v20 = vpop.f32.mrf.mxu0  ;;  %v451_v21 = vpop.f32.mrf.mxu1 }
  0xf0   :  { %v240_v22 = vcombine.high %v239_v18, %v239_v18  ;;  %v247_v23 = vrot.slane %v239_v18, %v238_v16 }
  0xf1   :  { %v148_v27 = vpop.f32.mrf.mxu0 }
  0xf2   :  { %v254_v24 = vrot.slane %v240_v22, %v238_v16  ;;  %v258_v25 = vrot.slane %v247_v23, %v634_v19 }
  0xf4   :  { %v262_v28 = vrot.slane %v254_v24, %v634_v19  ;;  %v265_v29 = vadd.f32 %v258_v25, %v148_v27 }
  0xf6   :  { %v266_v30 = vadd.f32 %v444_v20, %v262_v28  ;;  %v274_v31 = vadd.f32 %v428_v26, %v265_v29 }
  0xf8   :  { %v275_v33 = vadd.f32 %v428_v26, %v266_v30  ;;  %v276_v34 = vmax.f32 %v274_v31, 0.0 }
  0xfa   :  { %v277_v35 = vmax.f32 %v275_v33, 0.0  ;;  %v285_v36 = vmul.f32 %v429_v32, %v276_v34 }
  0xfc   :  { %v288_v37 = vsel %vm287_vm2, %v285_v36, 0.0  ;;  %v286_v38 = vmul.f32 %v429_v32, %v277_v35 }
  0xfd   :  { %289 = vadd.xlane.f32.xlu0 %v288_v37 }
  0xfe   :  { %v291_v39 = vsel %vm287_vm2, %v286_v38, 0.0 }
 0x101   :  { %292 = vadd.xlane.f32.xlu0 %v291_v39 }
 0x186   :  { %v290_v42 = vpop.xlane.xlu0 %289 }
 0x187   :  { %v304_v44 = vadd.f32 %v302_v41, %v290_v42 }
 0x189   :  { %v313_v47 = vrot.slane %v304_v44, %v312_v43 }
 0x18a   :  { %v293_v45 = vpop.xlane.xlu0 %292 }
 0x18b   :  { %v305_v46 = vadd.f32 %v302_v41, %v293_v45 }
 0x18d   :  { %v317_v48 = vrot.slane %v305_v46, %v312_v43 }
 0x18f   :  { %v319_v49 = vsel %vm318_vm3, %v317_v48, %v313_v47 }
 0x190   :  { %v322_v50 = vsel %vm321_vm4, %v319_v49, -inf }
 0x191   :  { %323 = vmax.xlane.f32.xlu1 %v322_v50 }
 0x21a   :  { %v324_v52 = vpop.xlane.xlu1 %323 }
 0x21b   :  { %v329_v53 = vrot.slane %v324_v52, %v634_v19  ;;  %v333_v54 = vrot.slane %v324_v52, %v332_v51 }
 0x21d   :  { %v336_v55 = vsub.f32 %v304_v44, %v329_v53  ;;  %v337_v56 = vsub.f32 %v305_v46, %v333_v54 }
 0x21f   :  { %v338_v57 = vmul.f32 1.442695, %v336_v55  ;;  %v340_v58 = vmul.f32 1.442695, %v337_v56 }
 0x221   :  { %464 = vpow2.f32 %v338_v57 }
 0x222   :  { %466 = vpow2.f32 %v340_v58 }
 0x22e   :  { %v465_v59 = vpop.eup %464 }
 0x22f   :  { %v467_v60 = vpop.eup %466  ;;  %345 = vperm.xlu0 %463, %v465_v59  }
 0x230   :  { %348 = vperm.xlu1 %462, %v467_v60  }
 0x2aa   :  { %v346_v61 = vpop.permute.xlu0 %345 }
 0x2ab   :  { %v349_v62 = vpop.permute.xlu1 %348  ;;  %v353_v63 = vrot.slane %v346_v61, %v312_v43 }
 0x2ac   :  { %v357_v0 = vrot.slane %v349_v62, %v312_v43 }
 0x2ae   :  { %v358_v1 = vsel %vm318_vm3, %v357_v0, %v353_v63 }
 0x2af   :  { %v360_v2 = vsel %vm321_vm4, %v358_v1, 0.0 }
 0x2b0   :  { %361 = vadd.xlane.f32.xlu0 %v360_v2 }
 0x339   :  { %v362_v3 = vpop.xlane.xlu0 %361 }
 0x33a   :  { %468 = vrcp.f32 %v362_v3 }
 0x347   :  { %v469_v4 = vpop.eup %468 }
 0x348   :  { %v368_v5 = vrot.slane %v469_v4, %v634_v19  ;;  %v372_v9 = vrot.slane %v469_v4, %v332_v51 }
 0x34a   :  { %v375_v6 = vmul.f32 %v465_v59, %v368_v5  ;;  %v376_v10 = vmul.f32 %v467_v60, %v372_v9 }
 0x34c   :  { %379 = vperm.xlu1 %462, %v375_v6  }
 0x350   :  { %384 = vperm.xlu1 %462, %v376_v10  }
 0x3c7   :  { %v380_v11 = vpop.permute.xlu1 %379 }
 0x3c8   :  { %v387_v12 = vmul.f32 %v380_v11, %v621_v7 }
 0x3ca   :  { %v389_v13 = vsel %vm75_vm1, %v387_v12, 0.0 }
 0x3cb   :  { %v390_v14 = vrot.slane %v389_v13, 4  ;;  %v385_v15 = vpop.permute.xlu1 %384 }
 0x3cc   :  { %v388_v16 = vmul.f32 %v385_v15, %v623_v8 }
 0x3cd   :  { %v391_v17 = vadd.f32 %v390_v14, %v389_v13 }
 0x3ce   :  { %v396_v18 = vsel %vm75_vm1, %v388_v16, 0.0 }
 0x3cf   :  { %v392_v20 = vrot.slane %v391_v17, 2  ;;  %v397_v21 = vrot.slane %v396_v18, 4 }
 0x3d1   :  { %v393_v19 = vadd.f32 %v392_v20, %v391_v17  ;;  %v398_v22 = vadd.f32 %v397_v21, %v396_v18 }
 0x3d3   :  { %v399_v23 = vrot.slane %v398_v22, 2  ;;  %v394_v24 = vrot.slane %v393_v19, 1 }
 0x3d5   :  { %v400_v25 = vadd.f32 %v399_v23, %v398_v22  ;;  %v395_v7 = vadd.f32 %v394_v24, %v393_v19 }
 0x3d7   :  { %v401_v26 = vrot.slane %v400_v25, 1 }
 0x3d9   :  { %v402_v27 = vadd.f32 %v401_v26, %v400_v25 }
 0x3db   :  { %v405_v28 = vsel %vm318_vm3, %v402_v27, %v395_v7 }
 0x3dc   :  { %408 = vst.msk [vmem:[#allocation9] sm:$0x3] %vm407_vm5, %v405_v28 }
 0x3dd   :  { %541 = shalt.err (!%p538_p5)
}
 0x3de   :  { %418 = dma.vmem_to_hbm [thread:$0]  %s416_s5, 32, %s667_s7, [#allocation5]  }
 0x3df   :  { %554 = dma.done.wait [#allocation5], 32  }
 0x3e0   :  { %555 = vsyncadd [#allocation5], 4294967264 }
 0x3e1   :  { %422 = vsyncpa [#allocation4], 1 }
 0x3e2   :  { %423 = vsyncpa [#allocation7], 1 }
 0x3e3   :  { %424 = vsyncpa [#allocation5], 1 }

</bundles_post_ra>
